<compile_context>
chip_gen: v5e
topology: v5e:2x2
jax: 0.10.0
libtpu: 0.0.40
codegen_flags: <defaults>
</compile_context>

<pallas_src>
import jax
import jax.numpy as jnp
from jax import lax
from jax.experimental import pallas as pl
from jax.experimental.pallas import tpu as pltpu

LANE = 128            # lane-dense last dim
MAX_TILE_ROWS = 8192  # 8192*128*4B = 4 MiB per f32 input tile; 2 inputs x 2 buffers = 16 MiB


def _num_tensorcores():
    """2 on dual-TensorCore chips (v4 / v5p / v7x megacore), else 1 (v5e / v6e)."""
    try:
        kind = jax.devices()[0].device_kind.lower()
    except Exception:  # pragma: no cover - defensive
        return 1
    if ("v4" in kind) or ("v5p" in kind) or ("7" in kind):
        return 2
    return 1


def _make_kernel(*, steps, n_tiles, has_partial, has_extra, last_rows, assume_binary):
    """Build the streaming-reduction kernel with all tiling facts baked in statically."""

    def accum(xv, yv, inter_ref, sxy_ref, bce_ref):
        # xv, yv: (tile_rows, LANE) f32.
        if assume_binary:
            # Valid only for targets in {0,1}: one EUP log instead of two.
            bce = jnp.maximum(jnp.log(jnp.where(yv > 0.5, xv, 1.0 - xv)), -100.0)
        else:
            # Torch parity: clamp each log at -100 BEFORE the multiply (0 * -100 = 0, no NaN).
            log_p = jnp.maximum(jnp.log(xv), -100.0)
            log_q = jnp.maximum(jnp.log(1.0 - xv), -100.0)
            bce = yv * log_p + (1.0 - yv) * log_q       # negation folded into the epilogue
        inter_ref[...] += jnp.sum(xv * yv, axis=0, keepdims=True)
        sxy_ref[...] += jnp.sum(xv + yv, axis=0, keepdims=True)
        bce_ref[...] += jnp.sum(bce, axis=0, keepdims=True)

    def kernel(x_ref, y_ref, inter_ref, sxy_ref, bce_ref):
        s = pl.program_id(1)

        @pl.when(s == 0)
        def _():
            inter_ref[...] = jnp.zeros_like(inter_ref)
            sxy_ref[...] = jnp.zeros_like(sxy_ref)
            bce_ref[...] = jnp.zeros_like(bce_ref)

        x = x_ref[...].astype(jnp.float32)
        y = y_ref[...].astype(jnp.float32)

        if has_partial or has_extra:
            tile_idx = pl.program_id(0) * steps + s
            full_limit = n_tiles - 1 if has_partial else n_tiles

            @pl.when(tile_idx < full_limit)       # full, unmasked tiles (hot path)
            def _():
                accum(x, y, inter_ref, sxy_ref, bce_ref)

            if has_partial:
                @pl.when(tile_idx == n_tiles - 1)  # only the last tile pays for the mask
                def _():
                    row = lax.broadcasted_iota(jnp.int32, x.shape, 0)
                    m = row < last_rows
                    accum(jnp.where(m, x, 0.0), jnp.where(m, y, 0.0),
                          inter_ref, sxy_ref, bce_ref)
        else:
            accum(x, y, inter_ref, sxy_ref, bce_ref)

    return kernel


def dice_bce_loss(inputs, targets, smooth=1.0, assume_binary_targets=False):
    """inputs: probabilities (any shape); targets: same shape. Returns scalar f32 loss."""
    x = inputs.reshape(-1)
    y = targets.reshape(-1)
    n = x.shape[0]

    # Ragged tail (< LANE elements): pad with zeros only. Zero pads contribute exactly 0 to
    # every partial sum (see accum), so no in-kernel element mask is needed. The common
    # n % 128 == 0 case takes the pad-free path (reshape is free).
    if n % LANE:
        pad = LANE - (n % LANE)
        x = jnp.pad(x, (0, pad))
        y = jnp.pad(y, (0, pad))
    rows = x.shape[0] // LANE
    x2 = x.reshape(rows, LANE)
    y2 = y.reshape(rows, LANE)

    # Tile sizing: full-extent block when everything fits in one tile (always layout-legal,
    # no masking), otherwise fixed 8192-row tiles (multiple of every sublane packing).
    if rows <= MAX_TILE_ROWS:
        tile_rows = rows
    else:
        tile_rows = MAX_TILE_ROWS
    n_tiles = -(-rows // tile_rows)
    has_partial = (rows % tile_rows) != 0
    last_rows = rows - (n_tiles - 1) * tile_rows

    ncores = max(1, min(_num_tensorcores(), n_tiles))
    steps = -(-n_tiles // ncores)
    has_extra = ncores * steps > n_tiles   # a core may own a couple of no-op grid steps

    if has_extra:
        # Clamp so skipped steps still DMA a valid (last) block; their compute is pl.when-gated off.
        in_index_map = lambda c, s: (jnp.minimum(c * steps + s, n_tiles - 1), 0)
    else:
        in_index_map = lambda c, s: (c * steps + s, 0)

    in_spec = pl.BlockSpec((tile_rows, LANE), in_index_map)
    out_spec = pl.BlockSpec((None, 1, LANE), lambda c, s: (c, 0, 0))   # resident per-core acc
    acc_shape = jax.ShapeDtypeStruct((ncores, 1, LANE), jnp.float32)

    kernel = _make_kernel(steps=steps, n_tiles=n_tiles, has_partial=has_partial,
                          has_extra=has_extra, last_rows=last_rows,
                          assume_binary=assume_binary_targets)

    inter_p, sxy_p, bce_p = pl.pallas_call(
        kernel,
        out_shape=(acc_shape, acc_shape, acc_shape),
        grid_spec=pltpu.PrefetchScalarGridSpec(
            num_scalar_prefetch=0,
            grid=(ncores, steps),
            in_specs=[in_spec, in_spec],
            out_specs=[out_spec, out_spec, out_spec],
        ),
        compiler_params=pltpu.CompilerParams(
            dimension_semantics=("parallel", "arbitrary"),
            vmem_limit_bytes=32 * 1024 * 1024,
        ),
    )(x2, y2)

    # Tiny epilogue: cross-lane / cross-core reduce + scalar dice / BCE math.
    intersection = jnp.sum(inter_p)
    sum_xy = jnp.sum(sxy_p)
    bce_mean = -jnp.sum(bce_p) * jnp.float32(1.0 / n)        # negation and 1/N folded here
    dice = 1.0 - (2.0 * intersection + smooth) / (sum_xy + smooth)
    return bce_mean + dice


def _dice_bce_ref(inputs, targets, smooth=1.0):
    """Pure-JAX reference mirroring the torch DiceBCELoss forward."""
    x = inputs.reshape(-1).astype(jnp.float32)
    y = targets.reshape(-1).astype(jnp.float32)
    intersection = jnp.sum(x * y)
    dice = 1.0 - (2.0 * intersection + smooth) / (jnp.sum(x) + jnp.sum(y) + smooth)
    bce = jnp.mean(-(y * jnp.maximum(jnp.log(x), -100.0)
                     + (1.0 - y) * jnp.maximum(jnp.log(1.0 - x), -100.0)))
    return bce + dice


if __name__ == "__main__":
    key = jax.random.PRNGKey(0)
    k1, k2, k3, k4 = jax.random.split(key, 4)

    # UNet++-style segmentation output: [B, C, H, W] probabilities + binary mask.
    B, C, H, W = 2, 4, 16, 16
    inputs = jax.nn.sigmoid(jax.random.normal(k1, (B, C, H, W), dtype=jnp.float32))
    targets = (jax.random.uniform(k2, (B, C, H, W)) > 0.5).astype(jnp.float32)

    loss = dice_bce_loss(inputs, targets)
    jax.block_until_ready(loss)
    ref = _dice_bce_ref(inputs, targets)
    assert jnp.allclose(loss, ref, atol=2e-5, rtol=2e-5), (loss, ref)

    # Ragged-size sanity check (n not a multiple of 128 -> zero-pad tail path).
    inputs_r = jax.nn.sigmoid(jax.random.normal(k3, (3, 5, 7), dtype=jnp.float32))
    targets_r = (jax.random.uniform(k4, (3, 5, 7)) > 0.5).astype(jnp.float32)
    loss_r = dice_bce_loss(inputs_r, targets_r)
    jax.block_until_ready(loss_r)
    ref_r = _dice_bce_ref(inputs_r, targets_r)
    assert jnp.allclose(loss_r, ref_r, atol=2e-5, rtol=2e-5), (loss_r, ref_r)

    print("KERNEL_OK")
</pallas_src>

<mosaic_0001>
module attributes {stable_mosaic.version = 11 : i64} {
  func.func @kernel(%arg0: i32, %arg1: i32, %arg2: memref<16x128xf32, #tpu.memory_space<vmem>>, %arg3: memref<16x128xf32, #tpu.memory_space<vmem>>, %arg4: memref<1x1x128xf32, #tpu.memory_space<vmem>>, %arg5: memref<1x1x128xf32, #tpu.memory_space<vmem>>, %arg6: memref<1x1x128xf32, #tpu.memory_space<vmem>>) attributes {dimension_semantics = [#tpu.dimension_semantics<parallel>, #tpu.dimension_semantics<arbitrary>], iteration_bounds = array<i64: 1, 1>, scalar_prefetch = 0 : i64, scratch_operands = 0 : i64, tpu.core_type = #tpu.core_type<tc>, window_params = [{transform_indices = @transform_0, window_bounds = array<i64: 16, 128>}, {transform_indices = @transform_1, window_bounds = array<i64: 16, 128>}, {transform_indices = @transform_2, window_bounds = array<i64: 1, 1, 128>}, {transform_indices = @transform_3, window_bounds = array<i64: 1, 1, 128>}, {transform_indices = @transform_4, window_bounds = array<i64: 1, 1, 128>}]} {
    %c0_i32 = arith.constant 0 : i32
    %0 = arith.cmpi eq, %arg1, %c0_i32 : i32
    %1 = arith.extui %0 : i1 to i32
    %c0_i32_0 = arith.constant 0 : i32
    %2 = arith.cmpi ne, %1, %c0_i32_0 : i32
    scf.if %2 {
      %cst_28 = arith.constant 0.000000e+00 : f32
      %44 = vector.broadcast %cst_28 : f32 to vector<1x128xf32>
      %c0_29 = arith.constant 0 : index
      %c0_30 = arith.constant 0 : index
      %c0_31 = arith.constant 0 : index
      %45 = vector.load %arg4[%c0_29, %c0_30, %c0_31] : memref<1x1x128xf32, #tpu.memory_space<vmem>>, vector<1x1x128xf32>
      %46 = vector.shape_cast %45 : vector<1x1x128xf32> to vector<1x128xf32>
      %47 = vector.shape_cast %44 : vector<1x128xf32> to vector<1x1x128xf32>
      tpu.vector_store %arg4[%c0_29, %c0_30, %c0_31], %47 {strides = array<i32>} : memref<1x1x128xf32, #tpu.memory_space<vmem>>, vector<1x1x128xf32>,
      %cst_32 = arith.constant 0.000000e+00 : f32
      %48 = vector.broadcast %cst_32 : f32 to vector<1x128xf32>
      %c0_33 = arith.constant 0 : index
      %c0_34 = arith.constant 0 : index
      %c0_35 = arith.constant 0 : index
      %49 = vector.load %arg5[%c0_33, %c0_34, %c0_35] : memref<1x1x128xf32, #tpu.memory_space<vmem>>, vector<1x1x128xf32>
      %50 = vector.shape_cast %49 : vector<1x1x128xf32> to vector<1x128xf32>
      %51 = vector.shape_cast %48 : vector<1x128xf32> to vector<1x1x128xf32>
      tpu.vector_store %arg5[%c0_33, %c0_34, %c0_35], %51 {strides = array<i32>} : memref<1x1x128xf32, #tpu.memory_space<vmem>>, vector<1x1x128xf32>,
      %cst_36 = arith.constant 0.000000e+00 : f32
      %52 = vector.broadcast %cst_36 : f32 to vector<1x128xf32>
      %c0_37 = arith.constant 0 : index
      %c0_38 = arith.constant 0 : index
      %c0_39 = arith.constant 0 : index
      %53 = vector.load %arg6[%c0_37, %c0_38, %c0_39] : memref<1x1x128xf32, #tpu.memory_space<vmem>>, vector<1x1x128xf32>
      %54 = vector.shape_cast %53 : vector<1x1x128xf32> to vector<1x128xf32>
      %55 = vector.shape_cast %52 : vector<1x128xf32> to vector<1x1x128xf32>
      tpu.vector_store %arg6[%c0_37, %c0_38, %c0_39], %55 {strides = array<i32>} : memref<1x1x128xf32, #tpu.memory_space<vmem>>, vector<1x1x128xf32>,
    } else {
    }
    %c0 = arith.constant 0 : index
    %c0_1 = arith.constant 0 : index
    %3 = vector.load %arg2[%c0, %c0_1] : memref<16x128xf32, #tpu.memory_space<vmem>>, vector<16x128xf32>
    %c0_2 = arith.constant 0 : index
    %c0_3 = arith.constant 0 : index
    %4 = vector.load %arg3[%c0_2, %c0_3] : memref<16x128xf32, #tpu.memory_space<vmem>>, vector<16x128xf32>
    %5 = math.log %3 : vector<16x128xf32>
    %cst = arith.constant -1.000000e+02 : f32
    %6 = vector.broadcast %cst : f32 to vector<16x128xf32>
    %7 = arith.maximumf %5, %6 : vector<16x128xf32>
    %cst_4 = arith.constant 1.000000e+00 : f32
    %8 = vector.broadcast %cst_4 : f32 to vector<16x128xf32>
    %9 = arith.subf %8, %3 : vector<16x128xf32>
    %10 = math.log %9 : vector<16x128xf32>
    %cst_5 = arith.constant -1.000000e+02 : f32
    %11 = vector.broadcast %cst_5 : f32 to vector<16x128xf32>
    %12 = arith.maximumf %10, %11 : vector<16x128xf32>
    %13 = arith.mulf %4, %7 : vector<16x128xf32>
    %cst_6 = arith.constant 1.000000e+00 : f32
    %14 = vector.broadcast %cst_6 : f32 to vector<16x128xf32>
    %15 = arith.subf %14, %4 : vector<16x128xf32>
    %16 = arith.mulf %15, %12 : vector<16x128xf32>
    %17 = arith.addf %13, %16 : vector<16x128xf32>
    %c0_7 = arith.constant 0 : index
    %c0_8 = arith.constant 0 : index
    %c0_9 = arith.constant 0 : index
    %18 = vector.load %arg4[%c0_7, %c0_8, %c0_9] : memref<1x1x128xf32, #tpu.memory_space<vmem>>, vector<1x1x128xf32>
    %19 = vector.shape_cast %18 : vector<1x1x128xf32> to vector<1x128xf32>
    %20 = arith.mulf %3, %4 : vector<16x128xf32>
    %cst_10 = arith.constant dense<0.000000e+00> : vector<128xf32>
    %21 = vector.multi_reduction <add>, %20, %cst_10 [0] : vector<16x128xf32> to vector<128xf32>
    %22 = vector.shape_cast %21 : vector<128xf32> to vector<1x128xf32>
    %23 = arith.addf %19, %22 : vector<1x128xf32>
    %c0_11 = arith.constant 0 : index
    %c0_12 = arith.constant 0 : index
    %c0_13 = arith.constant 0 : index
    %24 = vector.load %arg4[%c0_11, %c0_12, %c0_13] : memref<1x1x128xf32, #tpu.memory_space<vmem>>, vector<1x1x128xf32>
    %25 = vector.shape_cast %24 : vector<1x1x128xf32> to vector<1x128xf32>
    %26 = vector.shape_cast %23 : vector<1x128xf32> to vector<1x1x128xf32>
    tpu.vector_store %arg4[%c0_11, %c0_12, %c0_13], %26 {strides = array<i32>} : memref<1x1x128xf32, #tpu.memory_space<vmem>>, vector<1x1x128xf32>,
    %c0_14 = arith.constant 0 : index
    %c0_15 = arith.constant 0 : index
    %c0_16 = arith.constant 0 : index
    %27 = vector.load %arg5[%c0_14, %c0_15, %c0_16] : memref<1x1x128xf32, #tpu.memory_space<vmem>>, vector<1x1x128xf32>
    %28 = vector.shape_cast %27 : vector<1x1x128xf32> to vector<1x128xf32>
    %29 = arith.addf %3, %4 : vector<16x128xf32>
    %cst_17 = arith.constant dense<0.000000e+00> : vector<128xf32>
    %30 = vector.multi_reduction <add>, %29, %cst_17 [0] : vector<16x128xf32> to vector<128xf32>
    %31 = vector.shape_cast %30 : vector<128xf32> to vector<1x128xf32>
    %32 = arith.addf %28, %31 : vector<1x128xf32>
    %c0_18 = arith.constant 0 : index
    %c0_19 = arith.constant 0 : index
    %c0_20 = arith.constant 0 : index
    %33 = vector.load %arg5[%c0_18, %c0_19, %c0_20] : memref<1x1x128xf32, #tpu.memory_space<vmem>>, vector<1x1x128xf32>
    %34 = vector.shape_cast %33 : vector<1x1x128xf32> to vector<1x128xf32>
    %35 = vector.shape_cast %32 : vector<1x128xf32> to vector<1x1x128xf32>
    tpu.vector_store %arg5[%c0_18, %c0_19, %c0_20], %35 {strides = array<i32>} : memref<1x1x128xf32, #tpu.memory_space<vmem>>, vector<1x1x128xf32>,
    %c0_21 = arith.constant 0 : index
    %c0_22 = arith.constant 0 : index
    %c0_23 = arith.constant 0 : index
    %36 = vector.load %arg6[%c0_21, %c0_22, %c0_23] : memref<1x1x128xf32, #tpu.memory_space<vmem>>, vector<1x1x128xf32>
    %37 = vector.shape_cast %36 : vector<1x1x128xf32> to vector<1x128xf32>
    %cst_24 = arith.constant dense<0.000000e+00> : vector<128xf32>
    %38 = vector.multi_reduction <add>, %17, %cst_24 [0] : vector<16x128xf32> to vector<128xf32>
    %39 = vector.shape_cast %38 : vector<128xf32> to vector<1x128xf32>
    %40 = arith.addf %37, %39 : vector<1x128xf32>
    %c0_25 = arith.constant 0 : index
    %c0_26 = arith.constant 0 : index
    %c0_27 = arith.constant 0 : index
    %41 = vector.load %arg6[%c0_25, %c0_26, %c0_27] : memref<1x1x128xf32, #tpu.memory_space<vmem>>, vector<1x1x128xf32>
    %42 = vector.shape_cast %41 : vector<1x1x128xf32> to vector<1x128xf32>
    %43 = vector.shape_cast %40 : vector<1x128xf32> to vector<1x1x128xf32>
    tpu.vector_store %arg6[%c0_25, %c0_26, %c0_27], %43 {strides = array<i32>} : memref<1x1x128xf32, #tpu.memory_space<vmem>>, vector<1x1x128xf32>,
    return
  }
  func.func @transform_0(%arg0: i32, %arg1: i32) -> (i32, i32) {
    %c1_i32 = arith.constant 1 : i32
    %0 = arith.muli %arg0, %c1_i32 : i32
    %1 = arith.addi %0, %arg1 : i32
    %c0_i32 = arith.constant 0 : i32
    %c0_i32_0 = arith.constant 0 : i32
    return %1, %c0_i32 : i32, i32
  }
  func.func @transform_1(%arg0: i32, %arg1: i32) -> (i32, i32) {
    %c1_i32 = arith.constant 1 : i32
    %0 = arith.muli %arg0, %c1_i32 : i32
    %1 = arith.addi %0, %arg1 : i32
    %c0_i32 = arith.constant 0 : i32
    %c0_i32_0 = arith.constant 0 : i32
    return %1, %c0_i32 : i32, i32
  }
  func.func @transform_2(%arg0: i32, %arg1: i32) -> (i32, i32, i32) {
    %c0_i32 = arith.constant 0 : i32
    %c0_i32_0 = arith.constant 0 : i32
    %c0_i32_1 = arith.constant 0 : i32
    return %arg0, %c0_i32, %c0_i32_0 : i32, i32, i32
  }
  func.func @transform_3(%arg0: i32, %arg1: i32) -> (i32, i32, i32) {
    %c0_i32 = arith.constant 0 : i32
    %c0_i32_0 = arith.constant 0 : i32
    %c0_i32_1 = arith.constant 0 : i32
    return %arg0, %c0_i32, %c0_i32_0 : i32, i32, i32
  }
  func.func @transform_4(%arg0: i32, %arg1: i32) -> (i32, i32, i32) {
    %c0_i32 = arith.constant 0 : i32
    %c0_i32_0 = arith.constant 0 : i32
    %c0_i32_1 = arith.constant 0 : i32
    return %arg0, %c0_i32, %c0_i32_0 : i32, i32, i32
  }
}

</mosaic_0001>

<bundles_post_ra>
// kernel: tpu_custom_call.1
= control target key start
LH: loop header
LB: loop body
LE: loop exit
PB: predicated region body
PF: predicated region fallthrough
CT: control target
= control target key end

     0   :  { %10 = vsyncpa [#allocation3], 0  ;;  %s368_s0 = inlined_call_operand.hbm [shape: f32[16,128], index: 0, kind: input, shape index: {}]   ;;  %s369_s1 = inlined_call_operand.hbm [shape: f32[16,128], index: 1, kind: input, shape index: {}]   ;;  %s370_s2 = inlined_call_operand.hbm [shape: f32[1,1,128], index: 2, kind: output, shape index: {0}]   ;;  %s371_s3 = inlined_call_operand.hbm [shape: f32[1,1,128], index: 3, kind: output, shape index: {1}]   ;;  %s372_s4 = inlined_call_operand.hbm [shape: f32[1,1,128], index: 4, kind: output, shape index: {2}]  }
   0x1   :  { %11 = vsyncpa [#allocation6], 0 }
   0x2   :  { %12 = vsyncpa [#allocation4], 0 }
   0x3   :  { %13 = vsyncpa [#allocation9], 0  ;;  %s22_s17 = sshll.u32 %s368_s0, 4  ;;  %s320_s18 = smov [#allocation2]   ;;  %s23_s17 = int_to_ptr.hbm [resolvable:$true] %s22_s17 }
   0x4   :  { %s24_s19 = sshll.u32 %s320_s18, 4  ;;  %s39_s22 = sshll.u32 %s369_s1, 4  ;;  %s25_s19 = int_to_ptr.vmem [resolvable:$true] %s24_s19  ;;  %s40_s22 = int_to_ptr.hbm [resolvable:$true] %s39_s22 }
   0x5   :  { %s321_s23 = smov 128   ;;  %s322_s24 = smov 8  }
   0x6   :  { %30 = dma.hbm_to_vmem [thread:$0]  %s23_s17, 256, %s25_s19, [#allocation3], %s321_s23, %s321_s23, %s322_s24  }
   0x7   :  { %s323_s25 = smov [#allocation5]  }
   0x8   :  { %s41_s26 = sshll.u32 %s323_s25, 4  ;;  %s42_s26 = int_to_ptr.vmem [resolvable:$true] %s41_s26 }
   0x9   :  { %47 = dma.hbm_to_vmem [thread:$0]  %s40_s22, 256, %s42_s26, [#allocation6], %s321_s23, %s321_s23, %s322_s24  }
   0xa   :  { %312 = dma.done.wait [#allocation3], 256  }
   0xb   :  { %313 = vsyncadd [#allocation3], 4294967040 }
   0xc   :  { %314 = dma.done.wait [#allocation6], 256  }
   0xd   :  { %315 = vsyncadd [#allocation6], 4294967040  ;;  %v324_v0 = vmov 0.0   ;;  %v67_v1 = vld [vmem:[#allocation2] sm:$0xff]  ;;  %v68_v2 = vld [vmem:[#allocation2 + $0x8] sm:$0xff]  ;;  %s325_s0 = smov [#allocation8]  }
   0xe   :  { %65 = vst [vmem:[#allocation8] sm:$0x1] %v324_v0  ;;  %v69_v3 = vld [vmem:[#allocation5] sm:$0xff]  ;;  %v70_v4 = vld [vmem:[#allocation5 + $0x8] sm:$0xff]  ;;  %184 = vlog2.f32 %v67_v1  ;;  %v77_v7 = vsub.f32 1.0, %v67_v1  ;;  %v78_v10 = vsub.f32 1.0, %v68_v2 }
   0xf   :  { %64 = vst [vmem:[#allocation7] sm:$0x1] %v324_v0  ;;  %v106_v5 = vadd.f32 %v69_v3, %v67_v1  ;;  %v94_v6 = vmul.f32 %v69_v3, %v67_v1  ;;  %v107_v8 = vadd.f32 %v70_v4, %v68_v2  ;;  %v95_v9 = vmul.f32 %v70_v4, %v68_v2  ;;  %s143_s1 = sshll.u32 %s325_s0, 4  ;;  %s145_s29 = sshll.u32 %s371_s3, 4  ;;  %s144_s1 = int_to_ptr.vmem [resolvable:$true] %s143_s1  ;;  %s146_s29 = int_to_ptr.hbm [resolvable:$true] %s145_s29 }
  0x10   :  { %66 = vst [vmem:[#allocation10] sm:$0x1] %v324_v0  ;;  %186 = vlog2.f32 %v68_v2  ;;  %v87_v22 = vsub.f32 1.0, %v69_v3  ;;  %v88_v30 = vsub.f32 1.0, %v70_v4  ;;  %s326_s30 = smov [#allocation7]   ;;  %s134_s8 = sshll.u32 %s370_s2, 4  ;;  %s135_s8 = int_to_ptr.hbm [resolvable:$true] %s134_s8 }
  0x11   :  { %188 = vlog2.f32 %v77_v7  ;;  %v108_v11 = vadd.f32 %v107_v8, %v106_v5  ;;  %v96_v12 = vadd.f32 %v95_v9, %v94_v6  ;;  %s132_s5 = sshll.u32 %s326_s30, 4  ;;  %s327_s3 = smov [#allocation10]   ;;  %s133_s5 = int_to_ptr.vmem [resolvable:$true] %s132_s5 }
  0x12   :  { %190 = vlog2.f32 %v78_v10  ;;  %s154_s2 = sshll.u32 %s327_s3, 4  ;;  %s156_s11 = sshll.u32 %s372_s4, 4  ;;  %s155_s2 = int_to_ptr.vmem [resolvable:$true] %s154_s2  ;;  %s157_s11 = int_to_ptr.hbm [resolvable:$true] %s156_s11 }
  0x13   :  { %v109_v13 = vrot.slane %v108_v11, 4  ;;  %v97_v14 = vrot.slane %v96_v12, 4 }
  0x14   :  { %v185_v15 = vpop.eup %184 }
  0x15   :  { %v110_v17 = vadd.f32 %v109_v13, %v108_v11  ;;  %v98_v18 = vadd.f32 %v97_v14, %v96_v12  ;;  %v72_v19 = vmul.f32 0.6931472, %v185_v15  ;;  %v105_v40 = vld [vmem:[#allocation8] sm:$0x1] }
  0x16   :  { %v187_v16 = vpop.eup %186  ;;  %v93_v41 = vld [vmem:[#allocation7] sm:$0x1] }
  0x17   :  { %v189_v20 = vpop.eup %188  ;;  %v74_v21 = vmul.f32 0.6931472, %v187_v16  ;;  %v111_v24 = vrot.slane %v110_v17, 2  ;;  %v99_v25 = vrot.slane %v98_v18, 2  ;;  %v75_v26 = vmax.f32 %v72_v19, -100.0 }
  0x18   :  { %v191_v23 = vpop.eup %190  ;;  %v80_v27 = vmul.f32 0.6931472, %v189_v20  ;;  %v117_v55 = vld [vmem:[#allocation10] sm:$0x1] }
  0x19   :  { %v76_v28 = vmax.f32 %v74_v21, -100.0  ;;  %v82_v29 = vmul.f32 0.6931472, %v191_v23  ;;  %v112_v31 = vadd.f32 %v111_v24, %v110_v17  ;;  %v100_v32 = vadd.f32 %v99_v25, %v98_v18 }
  0x1a   :  { %v83_v33 = vmax.f32 %v80_v27, -100.0  ;;  %v85_v34 = vmul.f32 %v75_v26, %v69_v3 }
  0x1b   :  { %v84_v35 = vmax.f32 %v82_v29, -100.0  ;;  %v86_v36 = vmul.f32 %v76_v28, %v70_v4  ;;  %v113_v37 = vrot.slane %v112_v31, 1  ;;  %v101_v38 = vrot.slane %v100_v32, 1 }
  0x1c   :  { %v89_v39 = vmul.f32 %v87_v22, %v83_v33 }
  0x1d   :  { %v90_v42 = vmul.f32 %v88_v30, %v84_v35  ;;  %v114_v43 = vadd.f32 %v113_v37, %v112_v31  ;;  %v102_v44 = vadd.f32 %v101_v38, %v100_v32 }
  0x1e   :  { %v91_v45 = vadd.f32 %v89_v39, %v85_v34 }
  0x1f   :  { %v92_v46 = vadd.f32 %v90_v42, %v86_v36  ;;  %v115_v47 = vadd.f32 %v114_v43, %v105_v40  ;;  %v103_v48 = vadd.f32 %v102_v44, %v93_v41 }
  0x21   :  { %v118_v49 = vadd.f32 %v92_v46, %v91_v45  ;;  %116 = vst [vmem:[#allocation8] sm:$0x1] %v115_v47 }
  0x22   :  { %104 = vst [vmem:[#allocation7] sm:$0x1] %v103_v48  ;;  %148 = dma.vmem_to_hbm [thread:$0]  %s144_s1, 16, %s146_s29, [#allocation9]  }
  0x23   :  { %v119_v50 = vrot.slane %v118_v49, 4  ;;  %137 = dma.vmem_to_hbm [thread:$0]  %s133_s5, 16, %s135_s8, [#allocation4]  }
  0x25   :  { %v120_v51 = vadd.f32 %v119_v50, %v118_v49 }
  0x27   :  { %v121_v52 = vrot.slane %v120_v51, 2 }
  0x29   :  { %v122_v53 = vadd.f32 %v121_v52, %v120_v51 }
  0x2b   :  { %v123_v54 = vrot.slane %v122_v53, 1 }
  0x2d   :  { %v124_v56 = vadd.f32 %v123_v54, %v122_v53 }
  0x2f   :  { %v125_v57 = vadd.f32 %v124_v56, %v117_v55 }
  0x31   :  { %126 = vst [vmem:[#allocation10] sm:$0x1] %v125_v57 }
  0x32   :  { %159 = dma.vmem_to_hbm [thread:$0]  %s155_s2, 16, %s157_s11, [#allocation9]  }
  0x33   :  { %316 = dma.done.wait [#allocation4], 16  }
  0x34   :  { %317 = vsyncadd [#allocation4], 4294967280 }
  0x35   :  { %318 = dma.done.wait [#allocation9], 32  }
  0x36   :  { %319 = vsyncadd [#allocation9], 4294967264 }
  0x37   :  { %172 = vsyncpa [#allocation3], 1 }
  0x38   :  { %173 = vsyncpa [#allocation6], 1 }
  0x39   :  { %174 = vsyncpa [#allocation4], 1 }
  0x3a   :  { %175 = vsyncpa [#allocation9], 1 }

</bundles_post_ra>
